<compile_context>
chip_gen: v5e
topology: v5e:2x2
jax: 0.10.0
libtpu: 0.0.40
codegen_flags: <defaults>
</compile_context>

<pallas_src>
import functools

import jax
import jax.numpy as jnp
from jax.experimental import pallas as pl
from jax.experimental.pallas import tpu as pltpu


def _round_up(x, m):
    return ((x + m - 1) // m) * m


def _cdiv(a, b):
    return -(-a // b)


def _balanced_tile(total, target, multiple):
    """Tile size (multiple of `multiple`) splitting `total` near-evenly (minimal padding)."""
    total_r = _round_up(max(total, 1), multiple)
    target_r = _round_up(max(target, multiple), multiple)
    if total_r <= target_r:
        return total_r
    nt = _cdiv(total_r, target_r)
    return _round_up(_cdiv(total_r, nt), multiple)


def _divisor_hidden_tile(Hp, target):
    """Hidden (reduction) tile: multiple of 128 that divides Hp exactly (zero dead padding)."""
    units = Hp // 128
    nt_min = max(1, _cdiv(Hp, _round_up(max(target, 128), 128)))
    for nt in range(nt_min, units + 1):
        if units % nt == 0:
            return Hp // nt, nt
    return 128, units


def _vmem_capacity_bytes():
    try:
        cap = getattr(pltpu.get_tpu_info(), "vmem_capacity_bytes", None)
        if cap:
            return int(cap)
    except Exception:
        pass
    return 64 * 1024 * 1024  # conservative (v7x per-TensorCore)


# ----------------------------------------------------------------------------------------
# Kernels
# ----------------------------------------------------------------------------------------
def ffn_kernel_fused(x_ref, w1_ref, b1_ref, w2_ref, b2_ref, o_ref, *, matmul_dtype):
    """Weights fully VMEM-resident: single pass over a row tile, no reduction axis."""
    x = x_ref[...]                                                     # f32, reused for residual
    h = jnp.dot(x.astype(matmul_dtype), w1_ref[...],
                preferred_element_type=jnp.float32)
    h = jnp.maximum(h + b1_ref[...], 0.0)                              # fc1 + ReLU (dropout1 = id)
    y = jnp.dot(h.astype(matmul_dtype), w2_ref[...],
                preferred_element_type=jnp.float32)
    o_ref[...] = (y + b2_ref[...] + x).astype(o_ref.dtype)             # fc2 + bias + residual


def ffn_kernel_tiled(x_ref, w1_ref, b1_ref, w2_ref, b2_ref, o_ref, acc_ref,
                     *xmm_scratch, matmul_dtype):
    """Hidden dim tiled as a reduction grid axis (axis 1, size >= 2); f32 accumulator."""
    j = pl.program_id(1)
    nj = pl.num_programs(1)

    if xmm_scratch:
        # Cache the matmul-dtype cast of the row tile once (j == 0), reuse for all hidden tiles.
        xmm_ref = xmm_scratch[0]

        @pl.when(j == 0)
        def _():
            xmm_ref[...] = x_ref[...].astype(matmul_dtype)

        x_mm = xmm_ref[...]
    else:
        x_mm = x_ref[...].astype(matmul_dtype)

    h = jnp.dot(x_mm, w1_ref[...], preferred_element_type=jnp.float32)
    h = jnp.maximum(h + b1_ref[...], 0.0)
    partial = jnp.dot(h.astype(matmul_dtype), w2_ref[...],
                      preferred_element_type=jnp.float32)

    @pl.when(j == 0)
    def _():
        acc_ref[...] = partial                                         # no zero-init round trip

    @pl.when(jnp.logical_and(j > 0, j < nj - 1))
    def _():
        acc_ref[...] += partial

    @pl.when(j == nj - 1)
    def _():
        # Last partial folded straight into the output write (nj >= 2 guaranteed by wrapper).
        o_ref[...] = (acc_ref[...] + partial + b2_ref[...] + x_ref[...]).astype(o_ref.dtype)


# ----------------------------------------------------------------------------------------
# Parameter preparation (do once at init time, not per forward call)
# ----------------------------------------------------------------------------------------
def prepare_ffn_params(w1, b1, w2, b2, *, matmul_dtype=jnp.bfloat16):
    """Pad weights/biases to lane-dense shapes and cast weights once.

    Layout: w1 (C_in, H), b1 (H,), w2 (H, C_out), b2 (C_out,) — (in, out), i.e. transpose of
    PyTorch nn.Linear's (out, in). For this module H == C_in and C_out == C_in (residual).
    """
    C_in, H = w1.shape
    H2, C_out = w2.shape
    assert H2 == H and b1.shape == (H,) and b2.shape == (C_out,)
    assert C_in == C_out, "residual add requires in_channels == out_channels"

    Cp = _round_up(C_in, 128)
    Hp = _round_up(H, 128)

    def pad2(a, r, c):
        pr, pc = r - a.shape[0], c - a.shape[1]
        return a if (pr == 0 and pc == 0) else jnp.pad(a, ((0, pr), (0, pc)))

    return dict(
        w1=pad2(w1, Cp, Hp).astype(matmul_dtype),
        b1=pad2(b1.reshape(1, H).astype(jnp.float32), 1, Hp),
        w2=pad2(w2, Hp, Cp).astype(matmul_dtype),
        b2=pad2(b2.reshape(1, C_out).astype(jnp.float32), 1, Cp),
        dims=(C_in, H, C_out),
        matmul_dtype=matmul_dtype,
    )


# ----------------------------------------------------------------------------------------
# Forward wrapper
# ----------------------------------------------------------------------------------------
def ffn_forward(x, params, *, tm_target=None, th_target=1024, force_stream_weights=False):
    """x: (N, C_in) f32. params: output of prepare_ffn_params."""
    C_in, H, C_out = params["dims"]
    matmul_dtype = params["matmul_dtype"]
    w1p, b1p, w2p, b2p = params["w1"], params["b1"], params["w2"], params["b2"]
    Cp, Hp = w1p.shape
    N = x.shape[0]
    assert x.shape[1] == C_in

    mm_bytes = jnp.dtype(matmul_dtype).itemsize
    out_dtype = x.dtype
    out_bytes = jnp.dtype(out_dtype).itemsize
    cast_x = jnp.dtype(matmul_dtype) != jnp.dtype(x.dtype)

    vmem_budget = int(0.75 * _vmem_capacity_bytes())
    N8 = _round_up(max(N, 1), 8)

    def fused_vmem(tm):
        return (2 * tm * Cp * 4 + 2 * tm * Cp * out_bytes      # x / out tiles (double-buffered)
                + 4 * Cp * Hp * mm_bytes                       # w1 + w2 (double-buffered)
                + 2 * (Hp + Cp) * 4                            # biases
                + tm * Hp * (4 + mm_bytes)                     # hidden intermediate (f32 + cast)
                + tm * Cp * mm_bytes)                          # x cast

    def tiled_vmem(tm, th):
        return (2 * tm * Cp * 4 + 2 * tm * Cp * out_bytes
                + 4 * Cp * th * mm_bytes                       # w1 / w2 tiles (double-buffered)
                + 2 * (th + Cp) * 4
                + tm * Cp * 4                                  # f32 accumulator
                + (tm * Cp * mm_bytes if cast_x else 0)        # cached x cast
                + tm * th * (4 + mm_bytes))                    # hidden intermediate

    # ---- tile selection -----------------------------------------------------------------
    use_fused = False
    tm = _balanced_tile(N, tm_target or 512, 8)
    if not force_stream_weights:
        while tm > 8 and fused_vmem(tm) > vmem_budget:
            tm = max(8, _round_up(tm // 2, 8))
        use_fused = fused_vmem(tm) <= vmem_budget

    if use_fused:
        th, n_h = Hp, 1
    else:
        tm = _balanced_tile(N, tm_target or 768, 8)            # past weight-restream ridge
        th, n_h = _divisor_hidden_tile(Hp, th_target)
        while tiled_vmem(tm, th) > vmem_budget:
            if th > 128 and th >= tm:
                th, n_h = _divisor_hidden_tile(Hp, max(128, th // 2))
            elif tm > 8:
                tm = max(8, _round_up(tm // 2, 8))
            else:
                break
        if n_h == 1:                                           # single hidden tile -> fused form
            use_fused, th = True, Hp

    # megacore: give the row ('parallel') axis at least 2 tiles when there are enough rows
    if _cdiv(N8, tm) == 1 and N8 >= 512:
        tm = _round_up(_cdiv(N8, 2), 8)

    n_rows = _cdiv(N8, tm)
    Np = n_rows * tm

    # ---- pad activations (weights are already padded/cast in `params`) -------------------
    pad_r, pad_c = Np - N, Cp - C_in
    xp = x if (pad_r == 0 and pad_c == 0) else jnp.pad(x, ((0, pad_r), (0, pad_c)))

    est = fused_vmem(tm) if use_fused else tiled_vmem(tm, th)
    vmem_limit = int(min(max(est * 5 // 4, 32 * 1024 * 1024), vmem_budget))

    cost = pl.CostEstimate(
        flops=2 * N * C_in * H + 2 * N * H * C_out,
        transcendentals=0,
        bytes_accessed=int(xp.nbytes + Np * Cp * out_bytes
                           + (1 if use_fused else n_rows) * (w1p.nbytes + w2p.nbytes)
                           + b1p.nbytes + b2p.nbytes),
    )

    if use_fused:
        grid = (n_rows,)
        in_specs = [
            pl.BlockSpec((tm, Cp), lambda i: (i, 0)),          # x row tile
            pl.BlockSpec((Cp, Hp), lambda i: (0, 0)),          # w1 (resident, fetched once)
            pl.BlockSpec((1, Hp), lambda i: (0, 0)),           # b1
            pl.BlockSpec((Hp, Cp), lambda i: (0, 0)),          # w2 (resident, fetched once)
            pl.BlockSpec((1, Cp), lambda i: (0, 0)),           # b2
        ]
        out_specs = pl.BlockSpec((tm, Cp), lambda i: (i, 0))
        scratch = []
        dim_sem = ("parallel",)
        kernel = functools.partial(ffn_kernel_fused, matmul_dtype=matmul_dtype)
    else:
        grid = (n_rows, n_h)
        in_specs = [
            pl.BlockSpec((tm, Cp), lambda i, j: (i, 0)),       # x rows (resident over j)
            pl.BlockSpec((Cp, th), lambda i, j: (0, j)),       # w1 column tile
            pl.BlockSpec((1, th), lambda i, j: (0, j)),        # b1 tile
            pl.BlockSpec((th, Cp), lambda i, j: (j, 0)),       # w2 row tile
            pl.BlockSpec((1, Cp), lambda i, j: (0, 0)),        # b2
        ]
        out_specs = pl.BlockSpec((tm, Cp), lambda i, j: (i, 0))
        scratch = [pltpu.VMEM((tm, Cp), jnp.float32)]          # f32 accumulator
        if cast_x:
            scratch.append(pltpu.VMEM((tm, Cp), matmul_dtype)) # cached matmul-dtype x
        dim_sem = ("parallel", "arbitrary")
        kernel = functools.partial(ffn_kernel_tiled, matmul_dtype=matmul_dtype)

    out = pl.pallas_call(
        kernel,
        out_shape=jax.ShapeDtypeStruct((Np, Cp), out_dtype),
        grid_spec=pltpu.PrefetchScalarGridSpec(
            num_scalar_prefetch=0,
            grid=grid,
            in_specs=in_specs,
            out_specs=out_specs,
            scratch_shapes=scratch,
        ),
        compiler_params=pltpu.CompilerParams(
            dimension_semantics=dim_sem,
            vmem_limit_bytes=vmem_limit,
        ),
        cost_estimate=cost,
    )(xp, w1p, b1p, w2p, b2p)

    if pad_r or pad_c:
        out = out[:N, :C_out]
    return out


# ----------------------------------------------------------------------------------------
# References
# ----------------------------------------------------------------------------------------
def ffn_reference(x, w1, b1, w2, b2):
    h = jnp.maximum(x @ w1 + b1, 0.0)
    return (h @ w2 + b2) + x


def ffn_reference_mm(x, w1, b1, w2, b2, mm_dtype):
    """Reference with the kernel's matmul precision policy (mm_dtype operands, f32 acc)."""
    h = jnp.dot(x.astype(mm_dtype), w1.astype(mm_dtype),
                preferred_element_type=jnp.float32) + b1
    h = jnp.maximum(h, 0.0)
    y = jnp.dot(h.astype(mm_dtype), w2.astype(mm_dtype),
                preferred_element_type=jnp.float32) + b2
    return y + x


if __name__ == "__main__":
    # Small shapes consistent with the module: batch=2, seq=8, in_channels=32.
    batch, seq, C = 2, 8, 32
    key = jax.random.PRNGKey(0)
    k_x, k_w1, k_b1, k_w2, k_b2 = jax.random.split(key, 5)

    x3 = jax.random.normal(k_x, (batch, seq, C), dtype=jnp.float32)

    # PyTorch Linear init: U(-1/sqrt(fan_in), 1/sqrt(fan_in)); stored as (in, out).
    bound = 1.0 / jnp.sqrt(jnp.float32(C))
    w1 = jax.random.uniform(k_w1, (C, C), jnp.float32, -bound, bound)
    b1 = jax.random.uniform(k_b1, (C,), jnp.float32, -bound, bound)
    w2 = jax.random.uniform(k_w2, (C, C), jnp.float32, -bound, bound)
    b2 = jax.random.uniform(k_b2, (C,), jnp.float32, -bound, bound)

    x2 = x3.reshape(batch * seq, C)   # (tokens, channels) slab

    # 1) Exact-precision path (f32 matmuls, weights-resident fused kernel).
    p_f32 = prepare_ffn_params(w1, b1, w2, b2, matmul_dtype=jnp.float32)
    out_f32 = jax.block_until_ready(ffn_forward(x2, p_f32))
    ref = ffn_reference(x2, w1, b1, w2, b2)
    assert jnp.allclose(out_f32, ref, atol=1e-5, rtol=1e-5), "f32 mismatch vs reference"

    # 2) Performance path (bf16 matmul operands, f32 accumulate) vs matched-precision ref.
    p_bf16 = prepare_ffn_params(w1, b1, w2, b2, matmul_dtype=jnp.bfloat16)
    out_bf16 = jax.block_until_ready(ffn_forward(x2, p_bf16))
    ref_bf16 = ffn_reference_mm(x2, w1, b1, w2, b2, jnp.bfloat16)
    assert jnp.allclose(out_bf16, ref_bf16, atol=2e-2, rtol=2e-2), "bf16 mismatch vs reference"

    # 3) Ragged token count (exercises the row-padding path).
    x_ragged = x2[:13]
    out_ragged = jax.block_until_ready(ffn_forward(x_ragged, p_f32))
    ref_ragged = ffn_reference(x_ragged, w1, b1, w2, b2)
    assert jnp.allclose(out_ragged, ref_ragged, atol=1e-5, rtol=1e-5), "ragged mismatch"

    # 4) Forced weight-streaming (hidden-reduction) path: exercises the tiled kernel with
    #    the f32 accumulator, cached bf16 x scratch, and no-zero-init micro-opts.
    C2, N2 = 256, 64
    kk = jax.random.split(jax.random.PRNGKey(1), 5)
    xb = jax.random.normal(kk[0], (N2, C2), dtype=jnp.float32)
    bound2 = 1.0 / jnp.sqrt(jnp.float32(C2))
    w1b = jax.random.uniform(kk[1], (C2, C2), jnp.float32, -bound2, bound2)
    b1b = jax.random.uniform(kk[2], (C2,), jnp.float32, -bound2, bound2)
    w2b = jax.random.uniform(kk[3], (C2, C2), jnp.float32, -bound2, bound2)
    b2b = jax.random.uniform(kk[4], (C2,), jnp.float32, -bound2, bound2)
    p_stream = prepare_ffn_params(w1b, b1b, w2b, b2b, matmul_dtype=jnp.bfloat16)
    out_stream = jax.block_until_ready(
        ffn_forward(xb, p_stream, th_target=128, force_stream_weights=True))
    ref_stream = ffn_reference_mm(xb, w1b, b1b, w2b, b2b, jnp.bfloat16)
    assert jnp.allclose(out_stream, ref_stream, atol=2e-2, rtol=2e-2), "streamed-weights mismatch"

    print("KERNEL_OK")
</pallas_src>

<mosaic_0001>
module attributes {stable_mosaic.version = 11 : i64} {
  func.func @ffn_kernel_fused(%arg0: i32, %arg1: memref<16x128xf32, #tpu.memory_space<vmem>>, %arg2: memref<128x128xf32, #tpu.memory_space<vmem>>, %arg3: memref<1x128xf32, #tpu.memory_space<vmem>>, %arg4: memref<128x128xf32, #tpu.memory_space<vmem>>, %arg5: memref<1x128xf32, #tpu.memory_space<vmem>>, %arg6: memref<16x128xf32, #tpu.memory_space<vmem>>) attributes {dimension_semantics = [#tpu.dimension_semantics<parallel>], iteration_bounds = array<i64: 1>, scalar_prefetch = 0 : i64, scratch_operands = 0 : i64, tpu.core_type = #tpu.core_type<tc>, window_params = [{transform_indices = @transform_0, window_bounds = array<i64: 16, 128>}, {pipeline_mode = #tpu.pipeline_mode<synchronous>, transform_indices = @transform_1, window_bounds = array<i64: 128, 128>}, {pipeline_mode = #tpu.pipeline_mode<synchronous>, transform_indices = @transform_2, window_bounds = array<i64: 1, 128>}, {pipeline_mode = #tpu.pipeline_mode<synchronous>, transform_indices = @transform_3, window_bounds = array<i64: 128, 128>}, {pipeline_mode = #tpu.pipeline_mode<synchronous>, transform_indices = @transform_4, window_bounds = array<i64: 1, 128>}, {transform_indices = @transform_5, window_bounds = array<i64: 16, 128>}]} {
    %c0 = arith.constant 0 : index
    %c0_0 = arith.constant 0 : index
    %0 = vector.load %arg1[%c0, %c0_0] : memref<16x128xf32, #tpu.memory_space<vmem>>, vector<16x128xf32>
    %c0_1 = arith.constant 0 : index
    %c0_2 = arith.constant 0 : index
    %1 = vector.load %arg2[%c0_1, %c0_2] : memref<128x128xf32, #tpu.memory_space<vmem>>, vector<128x128xf32>
    %cst = arith.constant dense<0.000000e+00> : vector<16x128xf32>
    %2 = tpu.matmul %0, %1, %cst {dimension_numbers = #tpu.dot_dimension_numbers<[1], [0], [0], [1], [0, 0, 1, 1], [], []>} : vector<16x128xf32>, vector<128x128xf32>, vector<16x128xf32> -> vector<16x128xf32>
    %c0_3 = arith.constant 0 : index
    %c0_4 = arith.constant 0 : index
    %3 = vector.load %arg3[%c0_3, %c0_4] : memref<1x128xf32, #tpu.memory_space<vmem>>, vector<1x128xf32>
    %4 = vector.broadcast %3 : vector<1x128xf32> to vector<16x128xf32>
    %5 = arith.addf %2, %4 : vector<16x128xf32>
    %cst_5 = arith.constant 0.000000e+00 : f32
    %6 = vector.broadcast %cst_5 : f32 to vector<16x128xf32>
    %7 = arith.maximumf %5, %6 : vector<16x128xf32>
    %c0_6 = arith.constant 0 : index
    %c0_7 = arith.constant 0 : index
    %8 = vector.load %arg4[%c0_6, %c0_7] : memref<128x128xf32, #tpu.memory_space<vmem>>, vector<128x128xf32>
    %cst_8 = arith.constant dense<0.000000e+00> : vector<16x128xf32>
    %9 = tpu.matmul %7, %8, %cst_8 {dimension_numbers = #tpu.dot_dimension_numbers<[1], [0], [0], [1], [0, 0, 1, 1], [], []>} : vector<16x128xf32>, vector<128x128xf32>, vector<16x128xf32> -> vector<16x128xf32>
    %c0_9 = arith.constant 0 : index
    %c0_10 = arith.constant 0 : index
    %10 = vector.load %arg5[%c0_9, %c0_10] : memref<1x128xf32, #tpu.memory_space<vmem>>, vector<1x128xf32>
    %11 = vector.broadcast %10 : vector<1x128xf32> to vector<16x128xf32>
    %12 = arith.addf %9, %11 : vector<16x128xf32>
    %13 = arith.addf %12, %0 : vector<16x128xf32>
    %c0_11 = arith.constant 0 : index
    %c0_12 = arith.constant 0 : index
    %14 = vector.load %arg6[%c0_11, %c0_12] : memref<16x128xf32, #tpu.memory_space<vmem>>, vector<16x128xf32>
    tpu.vector_store %arg6[%c0_11, %c0_12], %13 {strides = array<i32>} : memref<16x128xf32, #tpu.memory_space<vmem>>, vector<16x128xf32>,
    return
  }
  func.func @transform_0(%arg0: i32) -> (i32, i32) {
    %c0_i32 = arith.constant 0 : i32
    %c0_i32_0 = arith.constant 0 : i32
    return %arg0, %c0_i32 : i32, i32
  }
  func.func @transform_1(%arg0: i32) -> (i32, i32) {
    %c0_i32 = arith.constant 0 : i32
    %c0_i32_0 = arith.constant 0 : i32
    %c0_i32_1 = arith.constant 0 : i32
    return %c0_i32, %c0_i32_0 : i32, i32
  }
  func.func @transform_2(%arg0: i32) -> (i32, i32) {
    %c0_i32 = arith.constant 0 : i32
    %c0_i32_0 = arith.constant 0 : i32
    %c0_i32_1 = arith.constant 0 : i32
    return %c0_i32, %c0_i32_0 : i32, i32
  }
  func.func @transform_3(%arg0: i32) -> (i32, i32) {
    %c0_i32 = arith.constant 0 : i32
    %c0_i32_0 = arith.constant 0 : i32
    %c0_i32_1 = arith.constant 0 : i32
    return %c0_i32, %c0_i32_0 : i32, i32
  }
  func.func @transform_4(%arg0: i32) -> (i32, i32) {
    %c0_i32 = arith.constant 0 : i32
    %c0_i32_0 = arith.constant 0 : i32
    %c0_i32_1 = arith.constant 0 : i32
    return %c0_i32, %c0_i32_0 : i32, i32
  }
  func.func @transform_5(%arg0: i32) -> (i32, i32) {
    %c0_i32 = arith.constant 0 : i32
    %c0_i32_0 = arith.constant 0 : i32
    return %arg0, %c0_i32 : i32, i32
  }
}

</mosaic_0001>

<bundles_post_ra>
// kernel: tpu_custom_call.1
= control target key start
LH: loop header
LB: loop body
LE: loop exit
PB: predicated region body
PF: predicated region fallthrough
CT: control target
= control target key end

     0   :  { %10 = vsyncpa [#allocation3], 0  ;;  %s390_s0 = inlined_call_operand.hbm [shape: f32[16,128], index: 0, kind: input, shape index: {}]   ;;  %s391_s1 = inlined_call_operand.hbm [shape: f32[128,128], index: 1, kind: input, shape index: {}]   ;;  %s392_s2 = inlined_call_operand.vmem [shape: f32[1,128], index: 2, kind: input, shape index: {}]   ;;  %s393_s3 = inlined_call_operand.hbm [shape: f32[128,128], index: 3, kind: input, shape index: {}]   ;;  %s394_s4 = inlined_call_operand.vmem [shape: f32[1,128], index: 4, kind: input, shape index: {}]   ;;  %s395_s5 = inlined_call_operand.hbm [shape: f32[16,128], index: 5, kind: output, shape index: {}]  }
   0x1   :  { %11 = vsyncpa [#allocation6], 0 }
   0x2   :  { %12 = vsyncpa [#allocation4], 0  ;;  %s30_s20 = sshll.u32 %s391_s1, 4  ;;  %s324_s21 = smov [#allocation5]   ;;  %s31_s20 = int_to_ptr.hbm [resolvable:$true] %s30_s20 }
   0x3   :  { %s32_s22 = sshll.u32 %s324_s21, 4  ;;  %s17_s25 = sshll.u32 %s390_s0, 4  ;;  %s33_s22 = int_to_ptr.vmem [resolvable:$true] %s32_s22  ;;  %s18_s25 = int_to_ptr.hbm [resolvable:$true] %s17_s25 }
   0x4   :  { %s325_s26 = smov 128   ;;  %s326_s27 = smov 8  }
   0x5   :  { %38 = dma.hbm_to_vmem [thread:$0]  %s31_s20, 2048, %s33_s22, [#allocation6], %s325_s26, %s325_s26, %s326_s27  }
   0x6   :  { %s327_s28 = smov [#allocation2]   ;;  %s45_s1 = sshll.u32 %s393_s3, 4  ;;  %s46_s1 = int_to_ptr.hbm [resolvable:$true] %s45_s1 }
   0x7   :  { %s19_s29 = sshll.u32 %s327_s28, 4  ;;  %s328_s0 = smov [#allocation7]   ;;  %s20_s29 = int_to_ptr.vmem [resolvable:$true] %s19_s29 }
   0x8   :  { %25 = dma.hbm_to_vmem [thread:$0]  %s18_s25, 256, %s20_s29, [#allocation3], %s325_s26, %s325_s26, %s326_s27  }
   0x9   :  { %s47_s7 = sshll.u32 %s328_s0, 4  ;;  %s48_s7 = int_to_ptr.vmem [resolvable:$true] %s47_s7 }
   0xa   :  { %53 = dma.hbm_to_vmem [thread:$0]  %s46_s1, 2048, %s48_s7, [#allocation6], %s325_s26, %s325_s26, %s326_s27  }
   0xb   :  { %318 = dma.done.wait [#allocation3], 256  }
   0xc   :  { %319 = vsyncadd [#allocation3], 4294967040 }
   0xd   :  { %320 = dma.done.wait [#allocation6], 4096  }
   0xe   :  { %321 = vsyncadd [#allocation6], 4294963200  ;;  %v85_v0 = vld [vmem:[#allocation5 + $0x78] sm:$0xff]  ;;  %v84_v1 = vld [vmem:[#allocation5 + $0x70] sm:$0xff]  ;;  %s329_s11 = smov [#allocation8]   ;;  %s168_s14 = sshll.u32 %s395_s5, 4  ;;  %s169_s14 = int_to_ptr.hbm [resolvable:$true] %s168_s14 }
   0xf   :  { %182 = vmatpush.msra.mxu2 %v85_v0  ;;  %90 = vmatpush.msra.mxu0 %v85_v0  ;;  %v83_v2 = vld [vmem:[#allocation5 + $0x68] sm:$0xff]  ;;  %v82_v3 = vld [vmem:[#allocation5 + $0x60] sm:$0xff]  ;;  %v81_v4 = vld [vmem:[#allocation5 + $0x58] sm:$0xff]  ;;  %s166_s12 = sshll.u32 %s329_s11, 4  ;;  %s167_s12 = int_to_ptr.vmem [resolvable:$true] %s166_s12 }
  0x10   :  { %v130_v5 = vld [vmem:[#allocation7 + $0x78] sm:$0xff]  ;;  %v129_v6 = vld [vmem:[#allocation7 + $0x70] sm:$0xff]  ;;  %v128_v8 = vld [vmem:[#allocation7 + $0x68] sm:$0xff] }
  0x11   :  { %183 = vmatpush.msra.mxu2 %v84_v1  ;;  %91 = vmatpush.msra.mxu0 %v84_v1  ;;  %v80_v7 = vld [vmem:[#allocation5 + $0x50] sm:$0xff]  ;;  %v79_v9 = vld [vmem:[#allocation5 + $0x48] sm:$0xff]  ;;  %v127_v10 = vld [vmem:[#allocation7 + $0x60] sm:$0xff] }
  0x12   :  { %198 = vmatpush.msra.mxu3 %v130_v5  ;;  %135 = vmatpush.msra.mxu1 %v130_v5  ;;  %v78_v11 = vld [vmem:[#allocation5 + $0x40] sm:$0xff]  ;;  %v126_v12 = vld [vmem:[#allocation7 + $0x58] sm:$0xff]  ;;  %v125_v14 = vld [vmem:[#allocation7 + $0x50] sm:$0xff] }
  0x13   :  { %184 = vmatpush.msra.mxu2 %v83_v2  ;;  %92 = vmatpush.msra.mxu0 %v83_v2  ;;  %v77_v13 = vld [vmem:[#allocation5 + $0x38] sm:$0xff]  ;;  %v76_v15 = vld [vmem:[#allocation5 + $0x30] sm:$0xff]  ;;  %v124_v16 = vld [vmem:[#allocation7 + $0x48] sm:$0xff] }
  0x14   :  { %199 = vmatpush.msra.mxu3 %v129_v6  ;;  %136 = vmatpush.msra.mxu1 %v129_v6  ;;  %v75_v17 = vld [vmem:[#allocation5 + $0x28] sm:$0xff]  ;;  %v123_v18 = vld [vmem:[#allocation7 + $0x40] sm:$0xff]  ;;  %v122_v20 = vld [vmem:[#allocation7 + $0x38] sm:$0xff] }
  0x15   :  { %185 = vmatpush.msra.mxu2 %v82_v3  ;;  %93 = vmatpush.msra.mxu0 %v82_v3  ;;  %v74_v19 = vld [vmem:[#allocation5 + $0x20] sm:$0xff]  ;;  %v73_v21 = vld [vmem:[#allocation5 + $0x18] sm:$0xff]  ;;  %v121_v22 = vld [vmem:[#allocation7 + $0x30] sm:$0xff] }
  0x16   :  { %200 = vmatpush.msra.mxu3 %v128_v8  ;;  %137 = vmatpush.msra.mxu1 %v128_v8  ;;  %v72_v23 = vld [vmem:[#allocation5 + $0x10] sm:$0xff]  ;;  %v120_v24 = vld [vmem:[#allocation7 + $0x28] sm:$0xff]  ;;  %v119_v26 = vld [vmem:[#allocation7 + $0x20] sm:$0xff] }
  0x17   :  { %186 = vmatpush.msra.mxu2 %v81_v4  ;;  %94 = vmatpush.msra.mxu0 %v81_v4  ;;  %v71_v25 = vld [vmem:[#allocation5 + $0x8] sm:$0xff]  ;;  %v70_v27 = vld [vmem:[#allocation5] sm:$0xff]  ;;  %v69_v28 = vld [vmem:[#allocation2 + $0x8] sm:$0xff] }
  0x18   :  { %201 = vmatpush.msra.mxu3 %v127_v10  ;;  %138 = vmatpush.msra.mxu1 %v127_v10  ;;  %v68_v29 = vld [vmem:[#allocation2] sm:$0xff]  ;;  %v118_v30 = vld [vmem:[#allocation7 + $0x18] sm:$0xff]  ;;  %v116_v32 = vld [vmem:[#allocation7 + $0x8] sm:$0xff] }
  0x19   :  { %187 = vmatpush.msra.mxu2 %v80_v7  ;;  %95 = vmatpush.msra.mxu0 %v80_v7  ;;  %v117_v31 = vld [vmem:[#allocation7 + $0x10] sm:$0xff]  ;;  %v115_v33 = vld [vmem:[#allocation7] sm:$0xff] }
  0x1a   :  { %202 = vmatpush.msra.mxu3 %v126_v12  ;;  %139 = vmatpush.msra.mxu1 %v126_v12  ;;  %v220_v34 = vld [vmem:[%s392_s2] ss:$0 sm:$0xff] }
  0x1b   :  { %188 = vmatpush.msra.mxu2 %v79_v9  ;;  %96 = vmatpush.msra.mxu0 %v79_v9  ;;  %v221_v41 = vld [vmem:[%s394_s4] ss:$0 sm:$0xff] }
  0x1c   :  { %203 = vmatpush.msra.mxu3 %v125_v14  ;;  %140 = vmatpush.msra.mxu1 %v125_v14 }
  0x1d   :  { %189 = vmatpush.msra.mxu2 %v78_v11  ;;  %97 = vmatpush.msra.mxu0 %v78_v11 }
  0x1e   :  { %204 = vmatpush.msra.mxu3 %v124_v16  ;;  %141 = vmatpush.msra.mxu1 %v124_v16 }
  0x1f   :  { %190 = vmatpush.msra.mxu2 %v77_v13  ;;  %98 = vmatpush.msra.mxu0 %v77_v13 }
  0x20   :  { %205 = vmatpush.msra.mxu3 %v123_v18  ;;  %142 = vmatpush.msra.mxu1 %v123_v18 }
  0x21   :  { %191 = vmatpush.msra.mxu2 %v76_v15  ;;  %99 = vmatpush.msra.mxu0 %v76_v15 }
  0x22   :  { %206 = vmatpush.msra.mxu3 %v122_v20  ;;  %143 = vmatpush.msra.mxu1 %v122_v20 }
  0x23   :  { %192 = vmatpush.msra.mxu2 %v75_v17  ;;  %100 = vmatpush.msra.mxu0 %v75_v17 }
  0x24   :  { %207 = vmatpush.msra.mxu3 %v121_v22  ;;  %144 = vmatpush.msra.mxu1 %v121_v22 }
  0x25   :  { %193 = vmatpush.msra.mxu2 %v74_v19  ;;  %101 = vmatpush.msra.mxu0 %v74_v19 }
  0x26   :  { %208 = vmatpush.msra.mxu3 %v120_v24  ;;  %145 = vmatpush.msra.mxu1 %v120_v24 }
  0x27   :  { %194 = vmatpush.msra.mxu2 %v73_v21  ;;  %102 = vmatpush.msra.mxu0 %v73_v21 }
  0x28   :  { %209 = vmatpush.msra.mxu3 %v119_v26  ;;  %146 = vmatpush.msra.mxu1 %v119_v26 }
  0x29   :  { %195 = vmatpush.msra.mxu2 %v72_v23  ;;  %103 = vmatpush.msra.mxu0 %v72_v23 }
  0x2a   :  { %210 = vmatpush.msra.mxu3 %v118_v30  ;;  %147 = vmatpush.msra.mxu1 %v118_v30 }
  0x2b   :  { %196 = vmatpush.msra.mxu2 %v71_v25  ;;  %104 = vmatpush.msra.mxu0 %v71_v25 }
  0x2c   :  { %211 = vmatpush.msra.mxu3 %v117_v31  ;;  %148 = vmatpush.msra.mxu1 %v117_v31 }
  0x2d   :  { %197 = vmatpush.msra.mxu2 %v70_v27  ;;  %105 = vmatpush.msra.mxu0 %v70_v27 }
  0x2e   :  { %109 = vmatmul.f32.vlgmr.msra.gmra.mxu2 %v69_v28  ;;  %106 = vmatmul.f32.vlgmr.msra.gmra.mxu0 %v68_v29 }
  0x2f   :  { %212 = vmatpush.msra.mxu3 %v116_v32  ;;  %149 = vmatpush.msra.mxu1 %v116_v32 }
  0x31   :  { %213 = vmatpush.msra.mxu3 %v115_v33  ;;  %150 = vmatpush.msra.mxu1 %v115_v33 }
  0xab   :  { %v107_v35 = vpop.f32.mrf.mxu0 }
  0xac   :  { %v108_v36 = vadd.f32 %v220_v34, %v107_v35 }
  0xae   :  { %v113_v37 = vmax.f32 %v108_v36, 0.0 }
  0xb0   :  { %151 = vmatmul.f32.vlgmr.msra.gmra.mxu1 %v113_v37 }
  0xb1   :  { %v110_v38 = vpop.f32.mrf.mxu2 }
  0xb2   :  { %v111_v39 = vadd.f32 %v220_v34, %v110_v38 }
  0xb4   :  { %v114_v40 = vmax.f32 %v111_v39, 0.0 }
  0xb6   :  { %154 = vmatmul.f32.vlgmr.msra.gmra.mxu3 %v114_v40 }
 0x12d   :  { %v152_v42 = vpop.f32.mrf.mxu1 }
 0x12e   :  { %v153_v43 = vadd.f32 %v221_v41, %v152_v42 }
 0x130   :  { %v158_v44 = vadd.f32 %v153_v43, %v68_v29 }
 0x132   :  { %160 = vst [vmem:[#allocation8] sm:$0xff] %v158_v44 }
 0x139   :  { %v155_v45 = vpop.f32.mrf.mxu3 }
 0x13a   :  { %v156_v46 = vadd.f32 %v221_v41, %v155_v45 }
 0x13c   :  { %v159_v47 = vadd.f32 %v156_v46, %v69_v28 }
 0x13e   :  { %161 = vst [vmem:[#allocation8 + $0x8] sm:$0xff] %v159_v47 }
 0x13f   :  { %174 = dma.vmem_to_hbm [thread:$0]  %s167_s12, 256, %s169_s14, [#allocation4], %s325_s26, %s325_s26, %s326_s27  }
 0x140   :  { %322 = dma.done.wait [#allocation4], 256  }
 0x141   :  { %323 = vsyncadd [#allocation4], 4294967040 }
 0x142   :  { %179 = vsyncpa [#allocation3], 1 }
 0x143   :  { %180 = vsyncpa [#allocation6], 1 }
 0x144   :  { %181 = vsyncpa [#allocation4], 1 }

</bundles_post_ra>
